<compile_context>
chip_gen: v7x
topology: tpu7x:2x2x1
jax: 0.10.0
libtpu: 0.0.40
codegen_flags: <defaults>
</compile_context>

<pallas_src>
import functools

import jax
import jax.numpy as jnp
from jax.experimental import pallas as pl
from jax.experimental.pallas import tpu as pltpu

LANE = 128   # vreg lane width
SUB = 8      # vreg sublane count


def _round_up(n, m):
    return ((n + m - 1) // m) * m


def _cdiv(a, b):
    return (a + b - 1) // b


def policy_net_kernel(x_ref, w1_ref, b1_ref, w2_ref, b2_ref, o_ref, *, action_dim):
    # Cast x to bf16 in-kernel (VPU); HBM read stays at the natural f32 width.
    x = x_ref[...].astype(w1_ref.dtype)

    # fc1 on the MXU: bf16 operands, f32 accumulation. Bias + ReLU in f32 (v5e-safe).
    h = jnp.dot(x, w1_ref[...], preferred_element_type=jnp.float32)
    h = jnp.maximum(h + b1_ref[...], 0.0)

    # fc2 on the MXU. b2's padded action lanes carry -1e30 (fused softmax mask),
    # so exp() on those lanes is exactly 0 and they drop out of the denominator.
    logits = jnp.dot(h.astype(w2_ref.dtype), w2_ref[...],
                     preferred_element_type=jnp.float32) + b2_ref[...]

    # Numerically stable softmax over dim=1 (f32), exact normalization.
    m = jnp.max(logits, axis=1, keepdims=True)
    e = jnp.exp(logits - m)
    denom = jnp.sum(e, axis=1, keepdims=True)
    probs = e / denom

    # Store only the real action columns (un-padded output block).
    o_ref[...] = probs[:, :action_dim].astype(o_ref.dtype)


def prepare_params(w1, b1, w2, b2, dtype=jnp.bfloat16):
    """One-time parameter prep (call at init, NOT per forward step).

    PyTorch Linear conventions in: w1 (hidden, state), b1 (hidden,),
    w2 (action, hidden), b2 (action,).  Out: (in, out) bf16 weights with the
    *output* dims zero-padded to 128-lane multiples (contraction dim of w1 is
    left at state_dim to match un-padded x), f32 row biases, and the softmax
    mask fused into b2's padded lanes.
    """
    hidden_dim, state_dim = w1.shape
    action_dim = w2.shape[0]
    H = _round_up(hidden_dim, LANE)
    A = _round_up(action_dim, LANE)
    # TODO(synk): on v6e/v7x, round H/A to 256 once hidden/action exceed 128 to
    # fill the 2x256x256 MXU; irrelevant for these memory-bound demo dims.

    w1_t = jnp.zeros((state_dim, H), dtype).at[:, :hidden_dim].set(
        jnp.transpose(w1).astype(dtype))
    w2_t = jnp.zeros((H, A), dtype).at[:hidden_dim, :action_dim].set(
        jnp.transpose(w2).astype(dtype))
    b1_r = jnp.zeros((1, H), jnp.float32).at[0, :hidden_dim].set(
        b1.astype(jnp.float32))
    # Fused softmax mask: padded action lanes get a huge negative bias.
    b2_r = jnp.full((1, A), -1e30, jnp.float32).at[0, :action_dim].set(
        b2.astype(jnp.float32))
    return (w1_t, b1_r, w2_t, b2_r), (state_dim, hidden_dim, action_dim)


def policy_net_forward(x, params, dims, *, batch_tile=512):
    """x: (B, state_dim) float.  Returns (B, action_dim) softmax probs (f32)."""
    w1_t, b1_r, w2_t, b2_r = params
    state_dim, hidden_dim, action_dim = dims
    B = x.shape[0]
    H = w1_t.shape[1]
    A = w2_t.shape[1]

    # Batch tiling: tiles <= batch_tile, >= 2 grid steps whenever the batch can
    # be split (so v7x megacore shards the batch across both TensorCores), and
    # TB balanced to minimize padded rows.
    B_min = _round_up(B, SUB)
    n_steps = max(_cdiv(B_min, batch_tile), 2 if B_min > SUB else 1)
    TB = _round_up(_cdiv(B_min, n_steps), SUB)
    B_pad = _round_up(B_min, TB)
    grid = (B_pad // TB,)

    # Only pad the batch rows (no lane padding, no dtype cast in the wrapper).
    x_p = x if B_pad == B else jnp.zeros((B_pad, state_dim), x.dtype).at[:B].set(x)

    # VMEM budget: resident weights + double-buffered x/out tiles + f32
    # intermediates (h, logits, e), with headroom; clamped under v7x's 64 MiB.
    weight_bytes = (state_dim * H + H * A) * w1_t.dtype.itemsize + (H + A) * 4
    tile_bytes = 2 * TB * state_dim * x_p.dtype.itemsize + 2 * TB * action_dim * 4
    interm_bytes = 4 * TB * max(H, A) * 4
    vmem_bytes = int(min(max(2 * (weight_bytes + tile_bytes + interm_bytes),
                             16 << 20), 48 << 20))

    kernel = functools.partial(policy_net_kernel, action_dim=action_dim)

    out = pl.pallas_call(
        kernel,
        out_shape=jax.ShapeDtypeStruct((B_pad, action_dim), jnp.float32),
        grid=grid,
        in_specs=[
            pl.BlockSpec((TB, state_dim), lambda i: (i, 0)),  # x: natural last dim
            pl.BlockSpec((state_dim, H), lambda i: (0, 0)),   # w1: VMEM-resident
            pl.BlockSpec((1, H), lambda i: (0, 0)),           # b1
            pl.BlockSpec((H, A), lambda i: (0, 0)),           # w2: VMEM-resident
            pl.BlockSpec((1, A), lambda i: (0, 0)),           # b2 (+fused mask)
        ],
        out_specs=pl.BlockSpec((TB, action_dim), lambda i: (i, 0)),  # un-padded out
        compiler_params=pltpu.CompilerParams(
            dimension_semantics=("parallel",),
            vmem_limit_bytes=vmem_bytes,
        ),
    )(x_p, w1_t, b1_r, w2_t, b2_r)

    # Drop batch padding rows (no column slice needed anymore).
    return out if B_pad == B else out[:B]


if __name__ == "__main__":
    # Small shapes consistent with PolicyNet(state_dim, hidden_dim, action_dim).
    # Batch deliberately not a multiple of 8 to exercise the row-padding path.
    batch, state_dim, hidden_dim, action_dim = 12, 16, 32, 8

    key = jax.random.PRNGKey(0)
    kx, kw1, kb1, kw2, kb2 = jax.random.split(key, 5)

    x = jax.random.normal(kx, (batch, state_dim), dtype=jnp.float32)
    # PyTorch Linear shapes: W is (out, in), b is (out,).
    w1 = jax.random.normal(kw1, (hidden_dim, state_dim), dtype=jnp.float32) * 0.1
    b1 = jax.random.normal(kb1, (hidden_dim,), dtype=jnp.float32) * 0.1
    w2 = jax.random.normal(kw2, (action_dim, hidden_dim), dtype=jnp.float32) * 0.1
    b2 = jax.random.normal(kb2, (action_dim,), dtype=jnp.float32) * 0.1

    # One-time parameter prep (transpose / pad / bf16-cast / fused mask).
    params, dims = prepare_params(w1, b1, w2, b2)
    fwd = jax.jit(functools.partial(policy_net_forward, params=params, dims=dims))

    out = jax.block_until_ready(fwd(x))

    # Pure-JAX f32 reference (same semantics as the PyTorch forward).
    h_ref = jnp.maximum(x @ w1.T + b1, 0.0)
    logits_ref = h_ref @ w2.T + b2
    ref = jax.nn.softmax(logits_ref, axis=1)

    assert out.shape == (batch, action_dim)
    # bf16 MXU operands -> relaxed tolerance vs the f32 reference.
    assert jnp.allclose(out, ref, atol=2e-2, rtol=0.0), float(jnp.max(jnp.abs(out - ref)))
    # Exact normalization: rows sum to 1 tightly.
    assert jnp.allclose(jnp.sum(out, axis=1), 1.0, atol=1e-3)

    print("KERNEL_OK")
</pallas_src>

<mosaic_0001>
module attributes {stable_mosaic.version = 11 : i64} {
  func.func @policy_net_kernel(%arg0: i32, %arg1: memref<8x16xf32, #tpu.memory_space<vmem>>, %arg2: memref<16x128xbf16, #tpu.memory_space<vmem>>, %arg3: memref<1x128xf32, #tpu.memory_space<vmem>>, %arg4: memref<128x128xbf16, #tpu.memory_space<vmem>>, %arg5: memref<1x128xf32, #tpu.memory_space<vmem>>, %arg6: memref<8x8xf32, #tpu.memory_space<vmem>>) attributes {dimension_semantics = [#tpu.dimension_semantics<parallel>], iteration_bounds = array<i64: 2>, scalar_prefetch = 0 : i64, scratch_operands = 0 : i64, tpu.core_type = #tpu.core_type<tc>, window_params = [{transform_indices = @transform_0, window_bounds = array<i64: 8, 16>}, {pipeline_mode = #tpu.pipeline_mode<synchronous>, transform_indices = @transform_1, window_bounds = array<i64: 16, 128>}, {pipeline_mode = #tpu.pipeline_mode<synchronous>, transform_indices = @transform_2, window_bounds = array<i64: 1, 128>}, {pipeline_mode = #tpu.pipeline_mode<synchronous>, transform_indices = @transform_3, window_bounds = array<i64: 128, 128>}, {pipeline_mode = #tpu.pipeline_mode<synchronous>, transform_indices = @transform_4, window_bounds = array<i64: 1, 128>}, {transform_indices = @transform_5, window_bounds = array<i64: 8, 8>}]} {
    %c0 = arith.constant 0 : index
    %c0_0 = arith.constant 0 : index
    %0 = vector.load %arg1[%c0, %c0_0] : memref<8x16xf32, #tpu.memory_space<vmem>>, vector<8x16xf32>
    %1 = arith.truncf %0 : vector<8x16xf32> to vector<8x16xbf16>
    %c0_1 = arith.constant 0 : index
    %c0_2 = arith.constant 0 : index
    %2 = vector.load %arg2[%c0_1, %c0_2] : memref<16x128xbf16, #tpu.memory_space<vmem>>, vector<16x128xbf16>
    %cst = arith.constant dense<0.000000e+00> : vector<8x128xf32>
    %3 = tpu.matmul %1, %2, %cst {dimension_numbers = #tpu.dot_dimension_numbers<[1], [0], [0], [1], [0, 0, 1, 1], [], []>} : vector<8x16xbf16>, vector<16x128xbf16>, vector<8x128xf32> -> vector<8x128xf32>
    %c0_3 = arith.constant 0 : index
    %c0_4 = arith.constant 0 : index
    %4 = vector.load %arg3[%c0_3, %c0_4] : memref<1x128xf32, #tpu.memory_space<vmem>>, vector<1x128xf32>
    %5 = vector.broadcast %4 : vector<1x128xf32> to vector<8x128xf32>
    %6 = arith.addf %3, %5 : vector<8x128xf32>
    %cst_5 = arith.constant 0.000000e+00 : f32
    %7 = vector.broadcast %cst_5 : f32 to vector<8x128xf32>
    %8 = arith.maximumf %6, %7 : vector<8x128xf32>
    %9 = arith.truncf %8 : vector<8x128xf32> to vector<8x128xbf16>
    %c0_6 = arith.constant 0 : index
    %c0_7 = arith.constant 0 : index
    %10 = vector.load %arg4[%c0_6, %c0_7] : memref<128x128xbf16, #tpu.memory_space<vmem>>, vector<128x128xbf16>
    %cst_8 = arith.constant dense<0.000000e+00> : vector<8x128xf32>
    %11 = tpu.matmul %9, %10, %cst_8 {dimension_numbers = #tpu.dot_dimension_numbers<[1], [0], [0], [1], [0, 0, 1, 1], [], []>} : vector<8x128xbf16>, vector<128x128xbf16>, vector<8x128xf32> -> vector<8x128xf32>
    %c0_9 = arith.constant 0 : index
    %c0_10 = arith.constant 0 : index
    %12 = vector.load %arg5[%c0_9, %c0_10] : memref<1x128xf32, #tpu.memory_space<vmem>>, vector<1x128xf32>
    %13 = vector.broadcast %12 : vector<1x128xf32> to vector<8x128xf32>
    %14 = arith.addf %11, %13 : vector<8x128xf32>
    %cst_11 = arith.constant dense<0xFF800000> : vector<8xf32>
    %15 = vector.multi_reduction <maximumf>, %14, %cst_11 [1] : vector<8x128xf32> to vector<8xf32>
    %16 = vector.shape_cast %15 : vector<8xf32> to vector<8x1xf32>
    %17 = vector.broadcast %16 : vector<8x1xf32> to vector<8x128xf32>
    %18 = arith.subf %14, %17 : vector<8x128xf32>
    %19 = math.exp %18 : vector<8x128xf32>
    %cst_12 = arith.constant dense<0.000000e+00> : vector<8xf32>
    %20 = vector.multi_reduction <add>, %19, %cst_12 [1] : vector<8x128xf32> to vector<8xf32>
    %21 = vector.shape_cast %20 : vector<8xf32> to vector<8x1xf32>
    %22 = vector.broadcast %21 : vector<8x1xf32> to vector<8x128xf32>
    %23 = arith.divf %19, %22 : vector<8x128xf32>
    %24 = vector.extract_strided_slice %23 {offsets = [0, 0], sizes = [8, 8], strides = [1, 1]} : vector<8x128xf32> to vector<8x8xf32>
    %c0_13 = arith.constant 0 : index
    %c0_14 = arith.constant 0 : index
    %25 = vector.load %arg6[%c0_13, %c0_14] : memref<8x8xf32, #tpu.memory_space<vmem>>, vector<8x8xf32>
    tpu.vector_store %arg6[%c0_13, %c0_14], %24 {strides = array<i32>} : memref<8x8xf32, #tpu.memory_space<vmem>>, vector<8x8xf32>,
    return
  }
  func.func @transform_0(%arg0: i32) -> (i32, i32) {
    %c0_i32 = arith.constant 0 : i32
    %c0_i32_0 = arith.constant 0 : i32
    return %arg0, %c0_i32 : i32, i32
  }
  func.func @transform_1(%arg0: i32) -> (i32, i32) {
    %c0_i32 = arith.constant 0 : i32
    %c0_i32_0 = arith.constant 0 : i32
    %c0_i32_1 = arith.constant 0 : i32
    return %c0_i32, %c0_i32_0 : i32, i32
  }
  func.func @transform_2(%arg0: i32) -> (i32, i32) {
    %c0_i32 = arith.constant 0 : i32
    %c0_i32_0 = arith.constant 0 : i32
    %c0_i32_1 = arith.constant 0 : i32
    return %c0_i32, %c0_i32_0 : i32, i32
  }
  func.func @transform_3(%arg0: i32) -> (i32, i32) {
    %c0_i32 = arith.constant 0 : i32
    %c0_i32_0 = arith.constant 0 : i32
    %c0_i32_1 = arith.constant 0 : i32
    return %c0_i32, %c0_i32_0 : i32, i32
  }
  func.func @transform_4(%arg0: i32) -> (i32, i32) {
    %c0_i32 = arith.constant 0 : i32
    %c0_i32_0 = arith.constant 0 : i32
    %c0_i32_1 = arith.constant 0 : i32
    return %c0_i32, %c0_i32_0 : i32, i32
  }
  func.func @transform_5(%arg0: i32) -> (i32, i32) {
    %c0_i32 = arith.constant 0 : i32
    %c0_i32_0 = arith.constant 0 : i32
    return %arg0, %c0_i32 : i32, i32
  }
}

</mosaic_0001>

<bundles_post_ra>
// kernel: policy_net_forward.1
= control target key start
LH: loop header
LB: loop body
LE: loop exit
PB: predicated region body
PF: predicated region fallthrough
CT: control target
= control target key end

     0   :  { %10 = vsyncpa [#allocation3], 0  ;;  %s657_s18 = smov 0   ;;  %s729_s0 = inlined_call_operand.vmem [shape: f32[16,16], index: 0, kind: input, shape index: {}]   ;;  %s730_s1 = inlined_call_operand.vmem [shape: bf16[16,128], index: 1, kind: input, shape index: {}]   ;;  %s731_s2 = inlined_call_operand.vmem [shape: f32[1,128], index: 2, kind: input, shape index: {}]   ;;  %s732_s3 = inlined_call_operand.hbm [shape: bf16[128,128], index: 3, kind: input, shape index: {}]   ;;  %s733_s4 = inlined_call_operand.vmem [shape: f32[1,128], index: 4, kind: input, shape index: {}]   ;;  %s734_s5 = inlined_call_operand.vmem [shape: f32[16,8], index: 5, kind: output, shape index: {}]  }
   0x1 LB: > { %s663_s19 = sadd.s32 4294967295, %s620_s18   ;;  %p488_p0 = scmp.ge.s32.totalorder %s620_s18, 1  ;;  %s620_s18 = sphi %s657_s18, %s16_s18  }
   0x2   : > { %p157_p1 = scmp.lt.s32.totalorder %s620_s18, 3  ;;  %s622_s20 = smov [#allocation2]  }
   0x3   : > { %s175_s21 = sshll.u32 %s622_s20, 4  ;;  %p735_p3 = scmp.eq.s32.totalorder %s663_s19, 0  ;;  %s176_s21 = int_to_ptr.vmem [resolvable:$true] %s175_s21 }
   0x4   : > { %p667_p2 = pnand %p488_p0, %p157_p1  ;;  %s582_s26 = scalar_lea.hbm %s732_s3, 1024 }
   0x5   : > { %p583_p6 = scmp.ne.s32.totalorder %s732_s3, %s582_s26  ;;  %p589_p10 = scmp.lt.u32.totalorder %s582_s26, %s732_s3 }
   0x6   : > { %s737_s22 = scalar_select %p667_p2, 1, 0 }
   0x7   : > { %p550_p4 = pneg %p667_p2 }
   0x9   : > { %p676_p5 = pnand %p735_p3, %p550_p4 }
   0xb   : > { %p584_p7 = pneg %p676_p5 }
   0xd   : > { %p585_p8 = pnand %p584_p7, %p583_p6 }
   0xf   : > { %p586_p9 = pneg %p585_p8 }
  0x11   : > { %p591_p11 = pnand %p589_p10, %p586_p9 }
  0x13   : > { %594 = shalt.err (!%p591_p11)
}
  0x14   : > { %s595_s6 = scalar_lea.vmem %s176_s21, 1024  ;;  %p603_p1 = scmp.lt.s32.totalorder %s176_s21, %s176_s21 }
  0x15   : > { %p596_p12 = scmp.ne.s32.totalorder %s176_s21, %s595_s6  ;;  %p604_p4 = scmp.lt.s32.totalorder %s595_s6, %s595_s6 }
  0x17   : > { %p598_p13 = pnand %p596_p12, %p584_p7  ;;  %p605_p3 = por %p604_p4, %p603_p1 }
  0x19   : > { %p599_p0 = pneg %p598_p13 }
  0x1b   : > { %p606_p2 = pnand %p605_p3, %p599_p0 }
  0x1d   : > { %609 = shalt.err (!%p606_p2)
}
  0x1e   : > { %s623_s7 = smov 64   ;;  %s624_s8 = smov 4  }
  0x1f   : > { %553 = dma.hbm_to_vmem [thread:$0]  (!%p676_p5), %s732_s3, 1024, %s176_s21, [#allocation3], %s623_s7, %s623_s7, %s624_s8  }
  0x20   : > { %p739_p6 = scmp.ne.s32.totalorder %s737_s22, 0 }
  0x21   : > { %p740_p8 = scmp.eq.s32.totalorder (!%p739_p6), %s663_s19, 0 }
  0x22   : > { %201 = sbr.rel (%p739_p6) target bundleno = 795 (0x31b), region = 40 }
  0x29   : > { %615 = dma.done.wait (%p740_p8), [#allocation3], 1024   ;;  %p741_p7 = pmov %p740_p8 }
  0x2a   : > { %p227_p2 = scmp.lt.s32.totalorder %s663_s19, 1  ;;  %v625_v0 = vmov 0.0   ;;  %vm626_vm0 = vmmov 0   ;;  %v569_v1 = vld [vmem:[%s730_s1] sm:$0xff]   ;;  %vm253_vm1 = vcmask 130048   ;;  %v571_v5 = vld [vmem:[#allocation2 + $0x8] sm:$0xff]  }
  0x2b   : > { %617 = vsyncadd (%p741_p7), [#allocation3], 4294966272  ;;  %520 = vmatprep.subr.bf16.mxu0 %v625_v0  ;;  %522 = vmatprep.mubr.msk.bf16.mxu0 %vm626_vm0, %v625_v0  ;;  %v570_v4 = vld [vmem:[#allocation2] sm:$0xff]   ;;  %v572_v6 = vld [vmem:[#allocation2 + $0x10] sm:$0xff]   ;;  %vm419_vm2 = vcmask 64512  }
  0x2c   : > { %s743_s19 = smov (!%p227_p2, %s663_s19), 1  ;;  %526 = vmatprep.subr.bf16.mxu1 %v625_v0  ;;  %542 = vmatprep.mubr.msk.bf16.mxu1 %vm626_vm0, %v625_v0  ;;  %v573_v7 = vld [vmem:[#allocation2 + $0x18] sm:$0xff]   ;;  %v574_v8 = vld [vmem:[#allocation2 + $0x20] sm:$0xff]   ;;  %v575_v9 = vld [vmem:[#allocation2 + $0x28] sm:$0xff]  }
  0x2d   : > { %s493_s11 = sshll.u32 %s743_s19, 3  ;;  %521 = vmatpush3.bf16.msra.mxu0 %v569_v1  ;;  %527 = vmatpush3.bf16.msra.mxu1 %v570_v4  ;;  %v576_v10 = vld [vmem:[#allocation2 + $0x30] sm:$0xff]   ;;  %v577_v11 = vld [vmem:[#allocation2 + $0x38] sm:$0xff]   ;;  %v495_v12 = vld [vmem:[%s731_s2] ss:$0 sm:$0xff] }
  0x2e   : > { %s230_s14 = scalar_lea.vmem %s729_s0, %s493_s11  ;;  %528 = vmatprep.subr.bf16.mxu1 %v625_v0  ;;  %v498_v20 = vld [vmem:[%s733_s4] ss:$0 sm:$0xff]  ;;  %s234_s25 = scalar_lea.vmem %s734_s5, %s493_s11 }
  0x2f   : > { %v236_v2 = vld [vmem:[%s230_s14] sm:$0xff] }
  0x30   : > { %v237_v3 = vpack.c.bf16 %v236_v2, %v236_v2 }
  0x31   : > { %529 = vmatpush3.bf16.msra.mxu1 %v571_v5 }
  0x32   : > { %523 = vmatmul.mubr.msk.bf16.vlgmr.msra.gmra.mrb[0].mxu0 %vm253_vm1, %v237_v3  ;;  %530 = vmatprep.subr.bf16.mxu1 %v625_v0 }
  0x35   : > { %531 = vmatpush3.bf16.msra.mxu1 %v572_v6 }
  0x36   : > { %532 = vmatprep.subr.bf16.mxu1 %v625_v0 }
  0x39   : > { %533 = vmatpush3.bf16.msra.mxu1 %v573_v7 }
  0x3a   : > { %534 = vmatprep.subr.bf16.mxu1 %v625_v0 }
  0x3d   : > { %535 = vmatpush3.bf16.msra.mxu1 %v574_v8 }
  0x3e   : > { %536 = vmatprep.subr.bf16.mxu1 %v625_v0 }
  0x41   : > { %537 = vmatpush3.bf16.msra.mxu1 %v575_v9 }
  0x42   : > { %538 = vmatprep.subr.bf16.mxu1 %v625_v0 }
  0x45   : > { %539 = vmatpush3.bf16.msra.mxu1 %v576_v10 }
  0x46   : > { %540 = vmatprep.subr.bf16.mxu1 %v625_v0 }
  0x49   : > { %541 = vmatpush3.bf16.msra.mxu1 %v577_v11 }
 0x105   : > { %v291_v13 = vpop.f32.mrb[0].mxu0 }
 0x106   : > { %v292_v14 = vadd.f32 %v495_v12, %v291_v13  ;;  %v524_v15 = vpop.f32.mrb[1].mxu0 }
 0x107   : > { %v294_v16 = vpop.f32.mrb[2].mxu0 }
 0x108   : > { %v297_v17 = vmax.f32 %v292_v14, 0.0  ;;  %v525_v18 = vpop.f32.mrb[3].mxu0 }
 0x10a   : > { %v298_v19 = vpack.c.bf16 %v297_v17, %v297_v17 }
 0x10c   : > { %543 = vmatmul.mubr.bf16.vlgmr.msra.gmra.mrb[0].mxu1 %v298_v19 }
 0x1df   : > { %v404_v21 = vpop.f32.mrb[0].mxu1 }
 0x1e0   : > { %v405_v22 = vadd.f32 %v498_v20, %v404_v21  ;;  %v544_v23 = vpop.f32.mrb[1].mxu1 }
 0x1e1   : > { %v407_v24 = vpop.f32.mrb[2].mxu1 }
 0x1e2   : > { %410 = vmax.xlane.f32.xlu0 %v405_v22  ;;  %v545_v25 = vpop.f32.mrb[3].mxu1 }
 0x26f   : > { %v411_v26 = vpop.xlane.xlu0 %410 }
 0x270   : > { %v412_v27 = vsub.f32 %v405_v22, %v411_v26 }
 0x272   : > { %v413_v28 = vmul.f32 1.442695, %v412_v27 }
 0x274   : > { %578 = vpow2.f32 %v413_v28 }
 0x27e   : > { %v579_v29 = vpop.eup %578 }
 0x27f   : > { %415 = vadd.xlane.f32.xlu0 %v579_v29 }
 0x30c   : > { %v416_v30 = vpop.xlane.xlu0 %415 }
 0x30d   : > { %580 = vrcp.f32 %v416_v30 }
 0x317   : > { %v581_v31 = vpop.eup %580 }
 0x318   : > { %v418_v32 = vmul.f32 %v581_v31, %v579_v29 }
 0x31a   : > { %420 = vst.msk [vmem:[%s234_s25] sm:$0xff] %vm419_vm2, %v418_v32 }
 0x31b PF: > { %s16_s18 = sadd.s32 1, %s620_s18  }
 0x31c   : > { %p13_p3 = scmp.ge.s32.totalorder %s16_s18, 4  }
 0x31e   :  { %15 = sbr.rel (!%p13_p3) target bundleno = 1 (0x1), region = 75 }
 0x325   :  { %440 = vsyncpa [#allocation3], 1 }
 0x326   :  { %442 = vsyncpa [#allocation3 + $0x1], 1 }

</bundles_post_ra>
